<compile_context>
chip_gen: v7x
topology: tpu7x:2x2x1
jax: 0.10.0
libtpu: 0.0.40
codegen_flags: <defaults>
</compile_context>

<pallas_src>
import functools
import math

import numpy as np
import jax
import jax.numpy as jnp
from jax import lax
from jax.experimental import pallas as pl
from jax.experimental.pallas import tpu as pltpu


# ----------------------------------------------------------------------------
# Host-side operator construction (mirrors AntiAliasInterpolation2d.__init__).
# ----------------------------------------------------------------------------
def _gaussian_1d(scale):
    """Normalized 1-D Gaussian taps + asymmetric pad sizes (ka, kb).
    outer(g, g) equals the module's normalized 2-D kernel."""
    sigma = (1.0 / scale - 1.0) / 2.0
    kernel_size = 2 * round(sigma * 4) + 1
    ka = kernel_size // 2
    kb = ka - 1 if kernel_size % 2 == 0 else ka
    ax = np.arange(kernel_size, dtype=np.float64)
    mean = (kernel_size - 1) / 2.0
    if sigma > 0:
        g = np.exp(-((ax - mean) ** 2) / (2.0 * sigma ** 2))
    else:
        g = np.ones_like(ax)
    g = g / g.sum()
    return g, ka, kb


def _conv_matrix(n, g, ka):
    """G (n, n) so that G @ x == 1-D conv of x with taps g under the module's
    zero padding (pad ka before / kb after, then 'valid' conv)."""
    k = len(g)
    G = np.zeros((n, n), dtype=np.float64)
    for i in range(n):
        for t in range(k):
            m = i + t - ka
            if 0 <= m < n:
                G[i, m] += g[t]
    return G


def _bilinear_matrix(in_size, out_size):
    """Row-stochastic (out_size, in_size) matrix reproducing
    F.interpolate(mode='bilinear', align_corners=True) along one axis.
    out_size == 1 -> source coordinate 0 (matches PyTorch align_corners=True)."""
    M = np.zeros((out_size, in_size), dtype=np.float64)
    if out_size == 1:
        M[0, 0] = 1.0
        return M
    step = (in_size - 1) / (out_size - 1)
    for i in range(out_size):
        src = i * step
        i0 = min(int(np.floor(src)), in_size - 1)
        lam = src - i0
        i1 = min(i0 + 1, in_size - 1)
        M[i, i0] += 1.0 - lam
        M[i, i1] += lam
    return M


def _fused_matrices(H, W, scale):
    """A_h (H_out, H), A_wT (W, W_out) such that
    out[c] = A_h @ x[c] @ A_wT  ==  interpolate(conv(pad(x[c]))) of the module."""
    g, ka, _ = _gaussian_1d(scale)
    H_out = int(math.floor(H * scale))
    W_out = int(math.floor(W * scale))
    Gh = _conv_matrix(H, g, ka)
    Gw = _conv_matrix(W, g, ka)
    Lh = _bilinear_matrix(H, H_out)
    Lw = _bilinear_matrix(W, W_out)
    A_h = (Lh @ Gh).astype(np.float32)          # (H_out, H)
    A_wT = (Gw.T @ Lw.T).astype(np.float32)     # (W, W_out)
    return A_h, A_wT, H_out, W_out


def _choose_channel_pack(BC, H, W, itemsize, vmem_block_budget=4 * 1024 * 1024):
    """Largest divisor of BC whose input block stays under a conservative VMEM
    budget (double-buffering + temps still fit v5e 16 MiB / v7x 32 MiB default
    scoped VMEM). Prefer leaving >= 2 grid steps so both v7x TCs get work."""
    divisors = [d for d in range(1, BC + 1) if BC % d == 0]
    fit = [d for d in divisors if d * H * W * itemsize <= vmem_block_budget] or [1]
    two_plus = [d for d in fit if BC // d >= 2]
    return max(two_plus) if two_plus else max(fit)


# ----------------------------------------------------------------------------
# Pallas kernel: Kc packed images -> two MXU matmuls (blur+resize fused).
# ----------------------------------------------------------------------------
def _aa_interp_kernel(x_ref, ah_ref, awt_ref, out_ref, *, Kc, H, W, H_out, W_out):
    x = x_ref[...].astype(jnp.float32)                          # (Kc, H, W)

    # W-side blur+resize: one lane-dense 2-D matmul with M = Kc*H.
    t = jnp.dot(
        x.reshape(Kc * H, W), awt_ref[...],
        precision=lax.Precision.HIGHEST,
        preferred_element_type=jnp.float32,
    )                                                           # (Kc*H, W_out)
    t = t.reshape(Kc, H, W_out)

    # H-side blur+resize: batched matmul over the packed channels.
    ah = jnp.broadcast_to(ah_ref[...], (Kc, H_out, H))
    out = lax.dot_general(
        ah, t,
        dimension_numbers=(((2,), (1,)), ((0,), (0,))),
        precision=lax.Precision.HIGHEST,
        preferred_element_type=jnp.float32,
    )                                                           # (Kc, H_out, W_out)
    out_ref[...] = out.astype(out_ref.dtype)


def anti_alias_interpolation2d(x, scale):
    """x: (B, C, H, W). Returns (B, C, floor(H*scale), floor(W*scale)).
    Matches AntiAliasInterpolation2d.forward (scale <= 1)."""
    if scale == 1.0:
        return x
    if scale > 1.0:
        # The PyTorch module's Gaussian construction is only defined for scale <= 1.
        raise ValueError("AntiAliasInterpolation2d only supports scale <= 1.0")

    B, C, H, W = x.shape
    A_h, A_wT, H_out, W_out = _fused_matrices(H, W, scale)

    BC = B * C
    xf = x.reshape(BC, H, W)                    # free reshape, no data movement
    Kc = _choose_channel_pack(BC, H, W, x.dtype.itemsize)
    grid = (BC // Kc,)

    kernel = functools.partial(
        _aa_interp_kernel, Kc=Kc, H=H, W=W, H_out=H_out, W_out=W_out)

    out = pl.pallas_call(
        kernel,
        out_shape=jax.ShapeDtypeStruct((BC, H_out, W_out), x.dtype),
        grid_spec=pltpu.PrefetchScalarGridSpec(
            num_scalar_prefetch=0,
            grid=grid,
            in_specs=[
                pl.BlockSpec((Kc, H, W), lambda i: (i, 0, 0)),
                pl.BlockSpec((H_out, H), lambda i: (0, 0)),
                pl.BlockSpec((W, W_out), lambda i: (0, 0)),
            ],
            out_specs=pl.BlockSpec((Kc, H_out, W_out), lambda i: (i, 0, 0)),
        ),
        compiler_params=pltpu.CompilerParams(
            dimension_semantics=("parallel",),
            vmem_limit_bytes=32 * 1024 * 1024,
        ),
    )(xf, jnp.asarray(A_h), jnp.asarray(A_wT))

    return out.reshape(B, C, H_out, W_out)


# ----------------------------------------------------------------------------
# Independent float64 NumPy reference of the ORIGINAL (unfused) pipeline.
# ----------------------------------------------------------------------------
def _reference_numpy(x, scale):
    x = np.asarray(x, dtype=np.float64)
    B, C, H, W = x.shape
    g, ka, kb = _gaussian_1d(scale)
    k2d = np.outer(g, g)
    K = len(g)
    H_out = int(math.floor(H * scale))
    W_out = int(math.floor(W * scale))
    xpad = np.pad(x, ((0, 0), (0, 0), (ka, kb), (ka, kb)))
    blur = np.zeros((B, C, H, W))
    for dy in range(K):
        for dx in range(K):
            blur += k2d[dy, dx] * xpad[:, :, dy:dy + H, dx:dx + W]
    Lh = _bilinear_matrix(H, H_out)
    Lw = _bilinear_matrix(W, W_out)
    out = np.einsum("oh,bchw,pw->bcop", Lh, blur, Lw)
    return out.astype(np.float32)


if __name__ == "__main__":
    key = jax.random.PRNGKey(0)
    B, C, H, W = 2, 4, 16, 16
    x = jax.random.normal(key, (B, C, H, W), dtype=jnp.float32)

    for scale in (0.5, 0.25):
        out = jax.block_until_ready(anti_alias_interpolation2d(x, scale))
        H_out, W_out = int(math.floor(H * scale)), int(math.floor(W * scale))
        assert out.shape == (B, C, H_out, W_out), out.shape
        ref = _reference_numpy(np.asarray(x), scale)
        # Tolerance leaves headroom for MXU f32 matmul rounding.
        assert np.allclose(np.asarray(out), ref, atol=2e-3, rtol=2e-3), (
            f"mismatch vs reference at scale={scale}")

    # scale == 1.0 identity path (matches the module's early return).
    same = anti_alias_interpolation2d(x, 1.0)
    assert jnp.allclose(same, x)

    print("KERNEL_OK")
</pallas_src>

<mosaic_0001>
module attributes {stable_mosaic.version = 11 : i64} {
  func.func @_aa_interp_kernel(%arg0: i32, %arg1: memref<4x16x16xf32, #tpu.memory_space<vmem>>, %arg2: memref<8x16xf32, #tpu.memory_space<vmem>>, %arg3: memref<16x8xf32, #tpu.memory_space<vmem>>, %arg4: memref<4x8x8xf32, #tpu.memory_space<vmem>>) attributes {dimension_semantics = [#tpu.dimension_semantics<parallel>], iteration_bounds = array<i64: 2>, scalar_prefetch = 0 : i64, scratch_operands = 0 : i64, tpu.core_type = #tpu.core_type<tc>, window_params = [{transform_indices = @transform_0, window_bounds = array<i64: 4, 16, 16>}, {pipeline_mode = #tpu.pipeline_mode<synchronous>, transform_indices = @transform_1, window_bounds = array<i64: 8, 16>}, {pipeline_mode = #tpu.pipeline_mode<synchronous>, transform_indices = @transform_2, window_bounds = array<i64: 16, 8>}, {transform_indices = @transform_3, window_bounds = array<i64: 4, 8, 8>}]} {
    %c0 = arith.constant 0 : index
    %c0_0 = arith.constant 0 : index
    %c0_1 = arith.constant 0 : index
    %0 = vector.load %arg1[%c0, %c0_0, %c0_1] : memref<4x16x16xf32, #tpu.memory_space<vmem>>, vector<4x16x16xf32>
    %1 = vector.shape_cast %0 : vector<4x16x16xf32> to vector<64x16xf32>
    %c0_2 = arith.constant 0 : index
    %c0_3 = arith.constant 0 : index
    %2 = vector.load %arg3[%c0_2, %c0_3] : memref<16x8xf32, #tpu.memory_space<vmem>>, vector<16x8xf32>
    %cst = arith.constant dense<0.000000e+00> : vector<64x8xf32>
    %3 = tpu.matmul %1, %2, %cst {dimension_numbers = #tpu.dot_dimension_numbers<[1], [0], [0], [1], [0, 0, 1, 1], [], []>, precision = #tpu.contract_precision<fp32>} : vector<64x16xf32>, vector<16x8xf32>, vector<64x8xf32> -> vector<64x8xf32>
    %4 = vector.shape_cast %3 : vector<64x8xf32> to vector<4x16x8xf32>
    %c0_4 = arith.constant 0 : index
    %c0_5 = arith.constant 0 : index
    %5 = vector.load %arg2[%c0_4, %c0_5] : memref<8x16xf32, #tpu.memory_space<vmem>>, vector<8x16xf32>
    %6 = vector.shape_cast %5 : vector<8x16xf32> to vector<1x8x16xf32>
    %7 = vector.broadcast %6 : vector<1x8x16xf32> to vector<4x8x16xf32>
    %cst_6 = arith.constant dense<0.000000e+00> : vector<4x8x8xf32>
    %8 = tpu.matmul %7, %4, %cst_6 {dimension_numbers = #tpu.dot_dimension_numbers<[2], [1], [1], [2], [0, 0, 0, 1, 1, 2], [0], [0]>, precision = #tpu.contract_precision<fp32>} : vector<4x8x16xf32>, vector<4x16x8xf32>, vector<4x8x8xf32> -> vector<4x8x8xf32>
    %c0_7 = arith.constant 0 : index
    %c0_8 = arith.constant 0 : index
    %c0_9 = arith.constant 0 : index
    %9 = vector.load %arg4[%c0_7, %c0_8, %c0_9] : memref<4x8x8xf32, #tpu.memory_space<vmem>>, vector<4x8x8xf32>
    tpu.vector_store %arg4[%c0_7, %c0_8, %c0_9], %8 {strides = array<i32>} : memref<4x8x8xf32, #tpu.memory_space<vmem>>, vector<4x8x8xf32>,
    return
  }
  func.func @transform_0(%arg0: i32) -> (i32, i32, i32) {
    %c0_i32 = arith.constant 0 : i32
    %c0_i32_0 = arith.constant 0 : i32
    %c0_i32_1 = arith.constant 0 : i32
    return %arg0, %c0_i32, %c0_i32_0 : i32, i32, i32
  }
  func.func @transform_1(%arg0: i32) -> (i32, i32) {
    %c0_i32 = arith.constant 0 : i32
    %c0_i32_0 = arith.constant 0 : i32
    %c0_i32_1 = arith.constant 0 : i32
    return %c0_i32, %c0_i32_0 : i32, i32
  }
  func.func @transform_2(%arg0: i32) -> (i32, i32) {
    %c0_i32 = arith.constant 0 : i32
    %c0_i32_0 = arith.constant 0 : i32
    %c0_i32_1 = arith.constant 0 : i32
    return %c0_i32, %c0_i32_0 : i32, i32
  }
  func.func @transform_3(%arg0: i32) -> (i32, i32, i32) {
    %c0_i32 = arith.constant 0 : i32
    %c0_i32_0 = arith.constant 0 : i32
    %c0_i32_1 = arith.constant 0 : i32
    return %arg0, %c0_i32, %c0_i32_0 : i32, i32, i32
  }
}

</mosaic_0001>

<bundles_post_ra>
// kernel: tpu_custom_call.1
= control target key start
LH: loop header
LB: loop body
LE: loop exit
PB: predicated region body
PF: predicated region fallthrough
CT: control target
= control target key end

     0   :  { %8 = vsyncpa [#allocation3], 0  ;;  %s4179_s0 = inlined_call_operand.hbm [shape: f32[8,16,16], index: 0, kind: input, shape index: {}]   ;;  %s4180_s1 = inlined_call_operand.vmem [shape: f32[8,16], index: 1, kind: input, shape index: {}]   ;;  %s4181_s2 = inlined_call_operand.vmem [shape: f32[16,8], index: 2, kind: input, shape index: {}]   ;;  %s4182_s3 = inlined_call_operand.hbm [shape: f32[8,8,8], index: 3, kind: output, shape index: {}]  }
   0x1   :  { %10 = vsyncpa [#allocation3 + $0x1], 0 }
   0x2   :  { %11 = vsyncpa [#allocation4], 0 }
   0x3   :  { %13 = vsyncpa [#allocation4 + $0x1], 0  ;;  %s3689_s12 = smov 0   ;;  %s3691_s13 = smov 0  }
   0x4   :  { %s3693_s14 = smov 0   ;;  %s3695_s15 = smov 0  }
   0x5 LB: > { %s3710_s16 = sadd.s32 4294967295, %s3658_s15   ;;  %s2919_s17 = sadd.s32 4294967294, %s3658_s15   ;;  %s3658_s15 = sphi %s3695_s15, %s4195_s15   ;;  %s3654_s14 = sphi %s3693_s14, %s4194_s14   ;;  %s3650_s13 = sphi %s3691_s13, %s4193_s13   ;;  %s3646_s12 = sphi %s3689_s12, %s4192_s12  }
   0x6   : > { %s3714_s18 = sadd.s32 1, %s3658_s15   ;;  %s26_s19 = sadd.s32 1, %s3654_s14 }
   0x7   : > { %s23_s20 = ssub.s32 %s3658_s15, %s3714_s18  ;;  %p33_p0 = scmp.ne.s32.totalorder %s3654_s14, %s3650_s13 }
   0x8   : > { %p24_p1 = scmp.eq.s32.totalorder %s23_s20, 0  ;;  %p34_p2 = scmp.eq.s32.totalorder %s3658_s15, 0 }
   0x9   : > { %p39_p3 = scmp.ne.s32.totalorder %s3650_s13, %s3646_s12  ;;  %p40_p4 = scmp.eq.s32.totalorder %s3710_s16, 0 }
   0xa   : > { %s3726_s21 = scalar_select %p24_p1, %s3654_s14, %s26_s19  }
   0xb   : > { %p3728_p5 = por %p34_p2, %p33_p0  ;;  %p3732_p6 = por %p40_p4, %p39_p3 }
   0xc   : > { %p105_p7 = scmp.eq.s32.totalorder %s3710_s16, 1  ;;  %p111_p8 = scmp.eq.s32.totalorder %s2919_s17, 1 }
   0xd   : > { %p3521_p10 = scmp.lt.s32.totalorder %s3658_s15, 2  ;;  %s137_s26 = sand.u32 1, %s3654_s14  }
   0xe   : > { %p3739_p11 = por %p105_p7, %p33_p0  ;;  %p3743_p12 = por %p111_p8, %p39_p3 }
   0xf   : > { %s2935_s27 = sshll.u32 %s3658_s15, 10  ;;  %s2922_s28 = sshll.u32 %s137_s26, 6 }
  0x10   : > { %s4186_s24 = scalar_select %p3739_p11, 1, 0 }
  0x11   : > { %s4187_s25 = scalar_select %p3743_p12, 1, 0 }
  0x12   : > { %s3752_s4 = scalar_lea.hbm %s4179_s0, %s2935_s27  ;;  %s141_s5 = scalar_lea.vmem [#allocation2], %s2922_s28 }
  0x13   : > { %s149_s6 = sshll.u32 %s141_s5, 4  ;;  %p3756_p13 = pnand %p3521_p10, %p3728_p5  ;;  %s3760_s6 = int_to_ptr.vmem [resolvable:$true] %s149_s6 }
  0x14   : > { %s3762_s8 = scalar_lea.sflag [#allocation3], %s137_s26  ;;  %s3562_s9 = scalar_lea.hbm %s3752_s4, 1024 }
  0x15   : > { %p3563_p0 = scmp.ne.s32.totalorder %s3752_s4, %s3562_s9  ;;  %p3564_p1 = pneg %p3756_p13 }
  0x16   : > { %s3567_s17 = scalar_lea.hbm %s4179_s0, 2048  ;;  %p3568_p4 = scmp.lt.u32.totalorder %s3752_s4, %s4179_s0 }
  0x17   : > { %p3565_p2 = pnand %p3564_p1, %p3563_p0  ;;  %p3569_p5 = scmp.lt.u32.totalorder %s3567_s17, %s3562_s9 }
  0x18   : > { %p3571_p8 = scmp.lt.u32.totalorder %s3562_s9, %s3752_s4 }
  0x19   : > { %p3566_p3 = pneg %p3565_p2  ;;  %p3570_p7 = por %p3569_p5, %p3568_p4 }
  0x1b   : > { %p3572_p10 = por %p3571_p8, %p3570_p7 }
  0x1d   : > { %p3573_p9 = pnand %p3572_p10, %p3566_p3 }
  0x1f   : > { %3576 = shalt.err (!%p3573_p9)
}
  0x20   : > { %s3577_s22 = scalar_lea.vmem %s3760_s6, 1024  ;;  %s3660_s26 = smov [#allocation2]  }
  0x21   : > { %p3578_p0 = scmp.ne.s32.totalorder %s3760_s6, %s3577_s22  ;;  %s3582_s27 = sshll.u32 %s3660_s26, 4  ;;  %s3583_s27 = int_to_ptr.vmem [resolvable:$false] %s3582_s27 }
  0x22   : > { %s3584_s28 = scalar_lea.vmem %s3583_s27, 2048  ;;  %p3585_p11 = scmp.lt.s32.totalorder %s3760_s6, %s3583_s27 }
  0x23   : > { %p3580_p2 = pnand %p3578_p0, %p3564_p1  ;;  %p3586_p4 = scmp.lt.s32.totalorder %s3584_s28, %s3577_s22 }
  0x25   : > { %p3581_p12 = pneg %p3580_p2  ;;  %p3587_p5 = por %p3586_p4, %p3585_p11 }
  0x27   : > { %p3588_p7 = pnand %p3587_p5, %p3581_p12 }
  0x29   : > { %3591 = shalt.err (!%p3588_p7)
}
  0x2a   : > { %s3661_s29 = smov 128   ;;  %s3662_s30 = smov 8  }
  0x2b   : > { %3516 = dma.hbm_to_vmem [thread:$0]  (!%p3756_p13), %s3752_s4, 1024, %s3760_s6, %s3762_s8, %s3661_s29, %s3661_s29, %s3662_s30  }
  0x2c   : > { %p2926_p9 = scmp.ge.s32.totalorder %s3658_s15, 1  ;;  %p157_p1 = scmp.lt.s32.totalorder %s3658_s15, 3 }
  0x2e   : > { %p158_p3 = pnand %p2926_p9, %p157_p1 }
  0x2f   : > { %s3793_s5 = sand.u32 (!%p158_p3), 1, %s3650_s13  }
  0x30   : > { %161 = sbr.rel (%p158_p3) target bundleno = 769 (0x301), region = 32  ;;  %s2927_s9 = sshll.u32 (!%p158_p3), %s3793_s5, 6 }
  0x31   : > { %s164_s10 = scalar_lea.sflag (!%p158_p3), [#allocation3], %s3793_s5  ;;  %s3797_s11 = scalar_lea.vmem (!%p158_p3), [#allocation2], %s2927_s9 }
  0x37   : > { %3637 = dma.done.wait (%p3732_p6), %s164_s10, 1024  }
  0x38   : > { %3639 = vsyncadd (%p3732_p6), %s164_s10, 4294966272  ;;  %vm202_vm0 = vcmask 130048   ;;  %v200_v0 = vld [vmem:[%s4181_s2] sm:$0xff]  ;;  %v201_v1 = vld [vmem:[%s4181_s2 + $0x8] sm:$0xff]  ;;  %vm3664_vm1 = vmmov 0   ;;  %s2928_s19 = sshll.u32 %s3793_s5, 5 }
  0x39   : > { %v192_v2 = vld [vmem:[%s3797_s11] sm:$0xff]  ;;  %v228_v3 = vand.u32 4294901760, %v200_v0  ;;  %v231_v4 = vand.u32 4294901760, %v201_v1  ;;  %v193_v6 = vld [vmem:[%s3797_s11 + $0x8] sm:$0xff]  ;;  %v194_v7 = vld [vmem:[%s3797_s11 + $0x10] sm:$0xff]  ;;  %vm2827_vm2 = vcmask 64512  }
  0x3a   : > { %v204_v5 = vsel %vm202_vm0, %v192_v2, 0  ;;  %v195_v8 = vld [vmem:[%s3797_s11 + $0x18] sm:$0xff]  ;;  %v207_v10 = vsel %vm202_vm0, %v193_v6, 0  ;;  %v210_v11 = vsel %vm202_vm0, %v194_v7, 0  ;;  %v196_v13 = vld [vmem:[%s3797_s11 + $0x20] sm:$0xff]  ;;  %v197_v18 = vld [vmem:[%s3797_s11 + $0x28] sm:$0xff] }
  0x3b   : > { %v3814_v9 = vand.u32 4294901760, %v204_v5  ;;  %v213_v12 = vsel %vm202_vm0, %v195_v8, 0  ;;  %v3820_v14 = vpack.c.bf16 %v231_v4, %v228_v3  ;;  %v3822_v15 = vand.u32 4294901760, %v207_v10  ;;  %v198_v43 = vld [vmem:[%s3797_s11 + $0x30] sm:$0xff]  ;;  %v199_v44 = vld [vmem:[%s3797_s11 + $0x38] sm:$0xff]  ;;  %s189_s20 = scalar_lea.vmem [#allocation5], %s2928_s19 }
  0x3c   : > { %v3824_v16 = vand.u32 4294901760, %v210_v11  ;;  %v3826_v17 = vand.u32 4294901760, %v213_v12  ;;  %v3832_v20 = vsub.f32 %v200_v0, %v228_v3  ;;  %v3834_v21 = vsub.f32 %v201_v1, %v231_v4  ;;  %s2846_s22 = sshll.u32 %s189_s20, 4  ;;  %s2936_s26 = sshll.u32 %s3710_s16, 9  ;;  %s4129_s22 = int_to_ptr.vmem [resolvable:$true] %s2846_s22 }
  0x3d   : > { %v3830_v19 = vsub.f32 %v204_v5, %v3814_v9  ;;  %v216_v22 = vsel %vm202_vm0, %v196_v13, 0  ;;  %3334 = vmatprep.subr.bf16.mxu0 %v3820_v14  ;;  %v3839_v23 = vsub.f32 %v207_v10, %v3822_v15  ;;  %v219_v30 = vsel %vm202_vm0, %v197_v18, 0  ;;  %s4134_s29 = scalar_lea.hbm %s4182_s3, %s2936_s26  ;;  %s2833_s30 = scalar_lea.sflag [#allocation4], %s3793_s5 }
  0x3e   : > { %v3842_v24 = vsub.f32 %v210_v11, %v3824_v16  ;;  %v3845_v25 = vsub.f32 %v213_v12, %v3826_v17  ;;  %v3847_v26 = vand.u32 4294901760, %v216_v22  ;;  %3336 = vmatpush3.bf16.msra.mxu0 %v3820_v14  ;;  %v377_v28 = vand.u32 4294901760, %v3832_v20  ;;  %s3592_s9 = scalar_lea.vmem %s4129_s22, 512  ;;  %p4189_p11 = scmp.ne.s32.totalorder %s4186_s24, 0 }
  0x3f   : > { %v296_v27 = vand.u32 4294901760, %v3830_v19  ;;  %v384_v29 = vand.u32 4294901760, %v3834_v21  ;;  %v306_v31 = vand.u32 4294901760, %v3839_v23  ;;  %v3869_v38 = vand.u32 4294901760, %v219_v30  ;;  %p3593_p6 = scmp.ne.s32.totalorder %s4129_s22, %s3592_s9  ;;  %s3666_s16 = smov [#allocation5]  }
  0x40   : > { %v316_v32 = vand.u32 4294901760, %v3842_v24  ;;  %v326_v33 = vand.u32 4294901760, %v3845_v25  ;;  %v3858_v34 = vsub.f32 %v216_v22, %v3847_v26  ;;  %v378_v36 = vsub.f32 %v3832_v20, %v377_v28  ;;  %s3596_s10 = sshll.u32 %s3666_s16, 4  ;;  %s3597_s10 = int_to_ptr.vmem [resolvable:$false] %s3596_s10 }
  0x41   : > { %v297_v35 = vsub.f32 %v3830_v19, %v296_v27  ;;  %v385_v37 = vsub.f32 %v3834_v21, %v384_v29  ;;  %v307_v39 = vsub.f32 %v3839_v23, %v306_v31  ;;  %v345_v48 = vsub.f32 %v219_v30, %v3869_v38  ;;  %p3594_p12 = pnand %p3593_p6, %p4189_p11  ;;  %s3598_s11 = scalar_lea.vmem %s3597_s10, 1024 }
  0x42   : > { %v317_v40 = vsub.f32 %v3842_v24, %v316_v32  ;;  %v327_v41 = vsub.f32 %v3845_v25, %v326_v33  ;;  %v336_v42 = vand.u32 4294901760, %v3858_v34  ;;  %v379_v46 = vand.u32 4294901760, %v378_v36  ;;  %p3599_p8 = scmp.lt.s32.totalorder %s4129_s22, %s3597_s10  ;;  %p3600_p10 = scmp.lt.s32.totalorder %s3598_s11, %s3592_s9 }
  0x43   : > { %v298_v45 = vand.u32 4294901760, %v297_v35  ;;  %v386_v47 = vand.u32 4294901760, %v385_v37  ;;  %v308_v49 = vand.u32 4294901760, %v307_v39  ;;  %v346_v53 = vand.u32 4294901760, %v345_v48  ;;  %p3595_p13 = pneg %p3594_p12 }
  0x44   : > { %v318_v50 = vand.u32 4294901760, %v317_v40  ;;  %v337_v51 = vsub.f32 %v3858_v34, %v336_v42  ;;  %v222_v54 = vsel %vm202_vm0, %v198_v43, 0  ;;  %v225_v55 = vsel %vm202_vm0, %v199_v44, 0  ;;  %p3601_p0 = por %p3600_p10, %p3599_p8 }
  0x45   : > { %3073 = vmatprep.mubr.f32.mxu0 %v298_v45  ;;  %v3337_v52 = vpack.c.bf16 %v386_v47, %v379_v46  ;;  %v328_v56 = vand.u32 4294901760, %v327_v41  ;;  %v3889_v57 = vand.u32 4294901760, %v222_v54  ;;  %v3891_v58 = vand.u32 4294901760, %v225_v55 }
  0x46   : > { %3074 = vmatmul.mubr.f32.vlgmr.msra.gmra.mrb[0].mxu0 %v308_v49  ;;  %v3341_v59 = vpack.c.bf16 %v3834_v21, %v3832_v20  ;;  %v338_v60 = vand.u32 4294901760, %v337_v51  ;;  %v347_v61 = vsub.f32 %v345_v48, %v346_v53  ;;  %v3349_v7 = vpack.c.bf16 %v384_v29, %v377_v28  ;;  %p3602_p2 = pnand %p3601_p0, %p3595_p13 }
  0x47   : > { %3076 = vmatprep.mubr.f32.mxu0 %v318_v50  ;;  %3338 = vmatprep.subr.bf16.mxu0 %v3337_v52  ;;  %v355_v62 = vsub.f32 %v222_v54, %v3889_v57  ;;  %v365_v63 = vsub.f32 %v225_v55, %v3891_v58  ;;  %v3663_v8 = vmov 0.0|0.0   ;;  %v3665_v10 = vmov 0.0  }
  0x48   : > { %3340 = vmatpush3.bf16.msra.mxu0 %v3337_v52  ;;  %v348_v0 = vand.u32 4294901760, %v347_v61  ;;  %3357 = vmatprep.subr.bf16.mxu1 %v3663_v8 }
  0x49   : > { %3342 = vmatprep.subr.bf16.mxu0 %v3341_v59  ;;  %v356_v1 = vand.u32 4294901760, %v355_v62  ;;  %v366_v2 = vand.u32 4294901760, %v365_v63  ;;  %3169 = vmatprep.mubr.msk.f32.mxu1 %vm3664_vm1, %v3665_v10 }
  0x4a   : > { %3077 = vmatmul.mubr.f32.gmra.mrb[2].mxu0 %v328_v56 }
  0x4b   : > { %3079 = vmatprep.mubr.f32.mxu0 %v338_v60  ;;  %v357_v3 = vsub.f32 %v355_v62, %v356_v1  ;;  %v367_v4 = vsub.f32 %v365_v63, %v366_v2 }
  0x4d   : > { %v358_v5 = vand.u32 4294901760, %v357_v3  ;;  %v368_v6 = vand.u32 4294901760, %v367_v4 }
  0x4e   : > { %3080 = vmatmul.mubr.f32.gmra.mrb[4].mxu0 %v348_v0 }
  0x4f   : > { %3082 = vmatprep.mubr.f32.mxu0 %v358_v5 }
  0x52   : > { %3083 = vmatmul.mubr.f32.gmra.mrb[6].mxu0 %v368_v6 }
  0x53   : > { %3089 = vmatprep.mubr.f32.mxu0 %v3814_v9 }
  0x56   : > { %3090 = vmatmul.mubr.f32.vlgmr.msra.gmra.mrb[0].mxu0 %v3822_v15 }
  0x57   : > { %3092 = vmatprep.mubr.f32.mxu0 %v3824_v16  ;;  %3344 = vmatpush3.bf16.msra.mxu0 %v3341_v59 }
  0x58   : > { %3346 = vmatprep.subr.bf16.mxu0 %v3820_v14 }
  0x5a   : > { %3093 = vmatmul.mubr.f32.gmra.mrb[2].mxu0 %v3826_v17 }
  0x5b   : > { %3095 = vmatprep.mubr.f32.mxu0 %v3847_v26 }
  0x5e   : > { %3096 = vmatmul.mubr.f32.gmra.mrb[4].mxu0 %v3869_v38 }
  0x5f   : > { %3098 = vmatprep.mubr.f32.mxu0 %v3889_v57 }
  0x62   : > { %3099 = vmatmul.mubr.f32.gmra.mrb[6].mxu0 %v3891_v58 }
  0x63   : > { %3105 = vmatprep.mubr.f32.mxu0 %v3830_v19 }
  0x66   : > { %3106 = vmatmul.mubr.f32.vlgmr.msra.gmra.mrb[0].mxu0 %v3839_v23 }
  0x67   : > { %3108 = vmatprep.mubr.f32.mxu0 %v3842_v24  ;;  %3348 = vmatpush3.bf16.msra.mxu0 %v3820_v14 }
  0x68   : > { %3350 = vmatprep.subr.bf16.mxu0 %v3349_v7 }
  0x6a   : > { %3109 = vmatmul.mubr.f32.gmra.mrb[2].mxu0 %v3845_v25 }
  0x6b   : > { %3111 = vmatprep.mubr.f32.mxu0 %v3858_v34 }
  0x6e   : > { %3112 = vmatmul.mubr.f32.gmra.mrb[4].mxu0 %v345_v48 }
  0x6f   : > { %3114 = vmatprep.mubr.f32.mxu0 %v355_v62 }
  0x72   : > { %3115 = vmatmul.mubr.f32.gmra.mrb[6].mxu0 %v365_v63 }
  0x73   : > { %3121 = vmatprep.mubr.f32.mxu0 %v296_v27 }
  0x76   : > { %3122 = vmatmul.mubr.f32.vlgmr.msra.gmra.mrb[0].mxu0 %v306_v31 }
  0x77   : > { %3124 = vmatprep.mubr.f32.mxu0 %v316_v32  ;;  %3352 = vmatpush3.bf16.msra.mxu0 %v3349_v7 }
  0x78   : > { %3354 = vmatprep.subr.bf16.mxu0 %v3820_v14 }
  0x7a   : > { %3125 = vmatmul.mubr.f32.gmra.mrb[2].mxu0 %v326_v33 }
  0x7b   : > { %3127 = vmatprep.mubr.f32.mxu0 %v336_v42 }
  0x7e   : > { %3128 = vmatmul.mubr.f32.gmra.mrb[4].mxu0 %v346_v53 }
  0x7f   : > { %3130 = vmatprep.mubr.f32.mxu0 %v356_v1 }
  0x82   : > { %3131 = vmatmul.mubr.f32.gmra.mrb[6].mxu0 %v366_v2 }
  0x83   : > { %3137 = vmatprep.mubr.f32.mxu0 %v3814_v9 }
  0x86   : > { %3138 = vmatmul.mubr.f32.vlgmr.msra.gmra.mrb[0].mxu0 %v3822_v15 }
  0x87   : > { %3140 = vmatprep.mubr.f32.mxu0 %v3824_v16  ;;  %3356 = vmatpush3.bf16.msra.mxu0 %v3820_v14 }
  0x8a   : > { %3141 = vmatmul.mubr.f32.gmra.mrb[2].mxu0 %v3826_v17 }
  0x8b   : > { %3143 = vmatprep.mubr.f32.mxu0 %v3847_v26 }
  0x8e   : > { %3144 = vmatmul.mubr.f32.gmra.mrb[4].mxu0 %v3869_v38 }
  0x8f   : > { %3146 = vmatprep.mubr.f32.mxu0 %v3889_v57 }
  0x92   : > { %3147 = vmatmul.mubr.f32.gmra.mrb[6].mxu0 %v3891_v58 }
  0x93   : > { %3153 = vmatprep.mubr.f32.mxu0 %v3814_v9  ;;  %v987_v9 = vld [vmem:[%s4180_s1] sm:$0xff] }
  0x94   : > { %v989_v11 = vsel %vm202_vm0, %v987_v9, 0 }
  0x95   : > { %v3951_v12 = vand.u32 4294901760, %v989_v11 }
  0x96   : > { %3154 = vmatmul.mubr.f32.vlgmr.msra.gmra.mrb[0].mxu0 %v3822_v15 }
  0x97   : > { %3156 = vmatprep.mubr.f32.mxu0 %v3824_v16  ;;  %v3954_v13 = vsub.f32 %v989_v11, %v3951_v12 }
  0x99   : > { %v3957_v14 = vand.u32 4294901760, %v3954_v13 }
  0x9a   : > { %3157 = vmatmul.mubr.f32.gmra.mrb[2].mxu0 %v3826_v17 }
  0x9b   : > { %3159 = vmatprep.mubr.f32.mxu0 %v3847_v26  ;;  %v1061_v18 = vsub.f32 %v3954_v13, %v3957_v14 }
  0x9d   : > { %v3963_v27 = vand.u32 4294901760, %v1061_v18 }
  0x9e   : > { %3160 = vmatmul.mubr.f32.gmra.mrb[4].mxu0 %v3869_v38 }
  0x9f   : > { %3162 = vmatprep.mubr.f32.mxu0 %v3889_v57 }
  0xa2   : > { %3163 = vmatmul.mubr.f32.gmra.mrb[6].mxu0 %v3891_v58 }
 0x169   : > { %v3155_v15 = vpop.f32.mrb[0].mxu0 }
 0x16a   : > { %v995_v16 = vand.u32 4294901760, %v3155_v15  ;;  %v941_v17 = vpop.f32.mrb[1].mxu0 }
 0x16b   : > { %v992_v19 = vand.u32 4294901760, %v941_v17 }
 0x16c   : > { %v1077_v20 = vsub.f32 %v3155_v15, %v995_v16 }
 0x16d   : > { %v3961_v21 = vpack.c.bf16 %v995_v16, %v992_v19  ;;  %v1070_v22 = vsub.f32 %v941_v17, %v992_v19  ;;  %v3158_v23 = vpop.f32.mrb[2].mxu0 }
 0x16e   : > { %v1078_v24 = vand.u32 4294901760, %v1077_v20  ;;  %v1454_v25 = vand.u32 4294901760, %v3158_v23  ;;  %v953_v26 = vpop.f32.mrb[3].mxu0 }
 0x16f   : > { %v1071_v28 = vand.u32 4294901760, %v1070_v22  ;;  %v3364_v29 = vpack.c.bf16 %v1077_v20, %v1070_v22  ;;  %v1451_v30 = vand.u32 4294901760, %v953_v26  ;;  %3359 = vmatpush3.bf16.msra.mxu1 %v3961_v21 }
 0x170   : > { %v1079_v31 = vsub.f32 %v1077_v20, %v1078_v24  ;;  %v3966_v32 = vsub.f32 %v3158_v23, %v1454_v25  ;;  %3360 = vmatprep.subr.bf16.mxu1 %v3663_v8 }
 0x171   : > { %v1072_v33 = vsub.f32 %v1070_v22, %v1071_v28  ;;  %v3969_v34 = vpack.c.bf16 %v1454_v25, %v1451_v30  ;;  %v3971_v35 = vsub.f32 %v953_v26, %v1451_v30  ;;  %v3161_v36 = vpop.f32.mrb[4].mxu0  ;;  %v3370_v37 = vpack.c.bf16 %v1078_v24, %v1071_v28 }
 0x172   : > { %v1080_v38 = vand.u32 4294901760, %v1079_v31  ;;  %v1537_v39 = vand.u32 4294901760, %v3966_v32  ;;  %v1913_v40 = vand.u32 4294901760, %v3161_v36  ;;  %v965_v41 = vpop.f32.mrb[5].mxu0  ;;  %3170 = vmatmul.mubr.f32.vlgmr.msra.gmra.mrb[0].mxu1 %v3963_v27 }
 0x173   : > { %v1073_v42 = vand.u32 4294901760, %v1072_v33  ;;  %v1530_v43 = vand.u32 4294901760, %v3971_v35  ;;  %v3382_v44 = vpack.c.bf16 %v3966_v32, %v3971_v35  ;;  %v1910_v45 = vand.u32 4294901760, %v965_v41  ;;  %3176 = vmatprep.mubr.msk.f32.mxu1 %vm3664_vm1, %v3665_v10 }
 0x174   : > { %v1538_v46 = vsub.f32 %v3966_v32, %v1537_v39  ;;  %v3981_v47 = vsub.f32 %v3161_v36, %v1913_v40 }
 0x175   : > { %v1531_v48 = vsub.f32 %v3971_v35, %v1530_v43  ;;  %v3984_v49 = vpack.c.bf16 %v1913_v40, %v1910_v45  ;;  %v3986_v50 = vsub.f32 %v965_v41, %v1910_v45  ;;  %v3164_v51 = vpop.f32.mrb[6].mxu0  ;;  %v3361_v52 = vpack.c.bf16 %v1080_v38, %v1073_v42 }
 0x176   : > { %v1539_v53 = vand.u32 4294901760, %v1538_v46  ;;  %v1996_v54 = vand.u32 4294901760, %v3981_v47  ;;  %v2372_v55 = vand.u32 4294901760, %v3164_v51  ;;  %v977_v56 = vpop.f32.mrb[7].mxu0  ;;  %v3388_v57 = vpack.c.bf16 %v1537_v39, %v1530_v43 }
 0x177   : > { %v1532_v58 = vand.u32 4294901760, %v1531_v48  ;;  %v1989_v59 = vand.u32 4294901760, %v3986_v50  ;;  %v3400_v60 = vpack.c.bf16 %v3981_v47, %v3986_v50  ;;  %v2369_v61 = vand.u32 4294901760, %v977_v56  ;;  %3362 = vmatpush3.bf16.msra.mxu1 %v3361_v52 }
 0x178   : > { %v1997_v62 = vsub.f32 %v3981_v47, %v1996_v54  ;;  %v3993_v63 = vsub.f32 %v3164_v51, %v2372_v55  ;;  %3363 = vmatprep.subr.bf16.mxu1 %v3663_v8 }
 0x179   : > { %v1990_v0 = vsub.f32 %v3986_v50, %v1989_v59  ;;  %v3997_v1 = vpack.c.bf16 %v2372_v55, %v2369_v61  ;;  %v3999_v2 = vsub.f32 %v977_v56, %v2369_v61  ;;  %v3379_v3 = vpack.c.bf16 %v1539_v53, %v1532_v58 }
 0x17a   : > { %v1998_v4 = vand.u32 4294901760, %v1997_v62  ;;  %v2455_v5 = vand.u32 4294901760, %v3993_v63  ;;  %3177 = vmatmul.mubr.f32.vlgmr.msra.gmra.mrb[0].mxu1 %v3951_v12  ;;  %v4003_v6 = vpack.c.bf16 %v1996_v54, %v1989_v59 }
 0x17b   : > { %v1991_v7 = vand.u32 4294901760, %v1990_v0  ;;  %v2448_v9 = vand.u32 4294901760, %v3999_v2  ;;  %v3418_v11 = vpack.c.bf16 %v3993_v63, %v3999_v2  ;;  %3365 = vmatpush3.bf16.msra.mxu1 %v3364_v29  ;;  %3183 = vmatprep.mubr.msk.f32.mxu1 %vm3664_vm1, %v3665_v10 }
 0x17c   : > { %v2456_v15 = vsub.f32 %v3993_v63, %v2455_v5  ;;  %3366 = vmatprep.subr.bf16.mxu1 %v3663_v8 }
 0x17d   : > { %v2449_v16 = vsub.f32 %v3999_v2, %v2448_v9  ;;  %v4013_v17 = vpack.c.bf16 %v2455_v5, %v2448_v9  ;;  %v3397_v18 = vpack.c.bf16 %v1998_v4, %v1991_v7 }
 0x17e   : > { %v2457_v19 = vand.u32 4294901760, %v2456_v15 }
 0x17f   : > { %v2450_v20 = vand.u32 4294901760, %v2449_v16 }
 0x181   : > { %v4015_v22 = vpack.c.bf16 %v2457_v19, %v2450_v20 }
 0x182   : > { %3184 = vmatmul.mubr.f32.vlgmr.msra.gmra.mrb[0].mxu1 %v3954_v13 }
 0x183   : > { %3368 = vmatpush3.bf16.msra.mxu1 %v3961_v21  ;;  %3190 = vmatprep.mubr.msk.f32.mxu1 %vm3664_vm1, %v3665_v10 }
 0x184   : > { %3369 = vmatprep.subr.bf16.mxu1 %v3663_v8 }
 0x18a   : > { %3191 = vmatmul.mubr.f32.vlgmr.msra.gmra.mrb[0].mxu1 %v3957_v14 }
 0x18b   : > { %3371 = vmatpush3.bf16.msra.mxu1 %v3370_v37  ;;  %3197 = vmatprep.mubr.msk.f32.mxu1 %vm3664_vm1, %v3665_v10 }
 0x18c   : > { %3372 = vmatprep.subr.bf16.mxu1 %v3663_v8 }
 0x192   : > { %3198 = vmatmul.mubr.f32.vlgmr.msra.gmra.mrb[0].mxu1 %v3951_v12 }
 0x193   : > { %3374 = vmatpush3.bf16.msra.mxu1 %v3961_v21  ;;  %3204 = vmatprep.mubr.msk.f32.mxu1 %vm3664_vm1, %v3665_v10 }
 0x194   : > { %3375 = vmatprep.subr.bf16.mxu1 %v3663_v8 }
 0x19a   : > { %3205 = vmatmul.mubr.f32.vlgmr.msra.gmra.mrb[0].mxu1 %v3951_v12 }
 0x19b   : > { %3377 = vmatpush3.bf16.msra.mxu1 %v3969_v34  ;;  %3211 = vmatprep.mubr.msk.f32.mxu1 %vm3664_vm1, %v3665_v10 }
 0x19c   : > { %3378 = vmatprep.subr.bf16.mxu1 %v3663_v8 }
 0x19e   : > { %3212 = vmatmul.mubr.f32.vlgmr.msra.gmra.mrb[2].mxu1 %v3963_v27 }
 0x19f   : > { %3380 = vmatpush3.bf16.msra.mxu1 %v3379_v3  ;;  %3218 = vmatprep.mubr.msk.f32.mxu1 %vm3664_vm1, %v3665_v10 }
 0x1a0   : > { %3381 = vmatprep.subr.bf16.mxu1 %v3663_v8 }
 0x1a6   : > { %3219 = vmatmul.mubr.f32.vlgmr.msra.gmra.mrb[2].mxu1 %v3951_v12 }
 0x1a7   : > { %3383 = vmatpush3.bf16.msra.mxu1 %v3382_v44  ;;  %3225 = vmatprep.mubr.msk.f32.mxu1 %vm3664_vm1, %v3665_v10 }
 0x1a8   : > { %3384 = vmatprep.subr.bf16.mxu1 %v3663_v8 }
 0x1ae   : > { %3226 = vmatmul.mubr.f32.vlgmr.msra.gmra.mrb[2].mxu1 %v3954_v13 }
 0x1af   : > { %3386 = vmatpush3.bf16.msra.mxu1 %v3969_v34  ;;  %3232 = vmatprep.mubr.msk.f32.mxu1 %vm3664_vm1, %v3665_v10 }
 0x1b0   : > { %3387 = vmatprep.subr.bf16.mxu1 %v3663_v8 }
 0x1b6   : > { %3233 = vmatmul.mubr.f32.vlgmr.msra.gmra.mrb[2].mxu1 %v3957_v14 }
 0x1b7   : > { %3389 = vmatpush3.bf16.msra.mxu1 %v3388_v57  ;;  %3239 = vmatprep.mubr.msk.f32.mxu1 %vm3664_vm1, %v3665_v10 }
 0x1b8   : > { %3390 = vmatprep.subr.bf16.mxu1 %v3663_v8 }
 0x1be   : > { %3240 = vmatmul.mubr.f32.vlgmr.msra.gmra.mrb[2].mxu1 %v3951_v12 }
 0x1bf   : > { %3392 = vmatpush3.bf16.msra.mxu1 %v3969_v34  ;;  %3246 = vmatprep.mubr.msk.f32.mxu1 %vm3664_vm1, %v3665_v10 }
 0x1c0   : > { %3393 = vmatprep.subr.bf16.mxu1 %v3663_v8 }
 0x1c6   : > { %3247 = vmatmul.mubr.f32.vlgmr.msra.gmra.mrb[2].mxu1 %v3951_v12 }
 0x1c7   : > { %3395 = vmatpush3.bf16.msra.mxu1 %v3984_v49  ;;  %3253 = vmatprep.mubr.msk.f32.mxu1 %vm3664_vm1, %v3665_v10 }
 0x1c8   : > { %3396 = vmatprep.subr.bf16.mxu1 %v3663_v8 }
 0x1ca   : > { %3254 = vmatmul.mubr.f32.vlgmr.msra.gmra.mrb[4].mxu1 %v3963_v27 }
 0x1cb   : > { %3398 = vmatpush3.bf16.msra.mxu1 %v3397_v18  ;;  %3260 = vmatprep.mubr.msk.f32.mxu1 %vm3664_vm1, %v3665_v10 }
 0x1cc   : > { %3399 = vmatprep.subr.bf16.mxu1 %v3663_v8 }
 0x1d2   : > { %3261 = vmatmul.mubr.f32.vlgmr.msra.gmra.mrb[4].mxu1 %v3951_v12 }
 0x1d3   : > { %3401 = vmatpush3.bf16.msra.mxu1 %v3400_v60  ;;  %3267 = vmatprep.mubr.msk.f32.mxu1 %vm3664_vm1, %v3665_v10 }
 0x1d4   : > { %3402 = vmatprep.subr.bf16.mxu1 %v3663_v8 }
 0x1da   : > { %3268 = vmatmul.mubr.f32.vlgmr.msra.gmra.mrb[4].mxu1 %v3954_v13 }
 0x1db   : > { %3404 = vmatpush3.bf16.msra.mxu1 %v3984_v49  ;;  %3274 = vmatprep.mubr.msk.f32.mxu1 %vm3664_vm1, %v3665_v10 }
 0x1dc   : > { %3405 = vmatprep.subr.bf16.mxu1 %v3663_v8 }
 0x1e2   : > { %3275 = vmatmul.mubr.f32.vlgmr.msra.gmra.mrb[4].mxu1 %v3957_v14 }
 0x1e3   : > { %3407 = vmatpush3.bf16.msra.mxu1 %v4003_v6  ;;  %3281 = vmatprep.mubr.msk.f32.mxu1 %vm3664_vm1, %v3665_v10 }
 0x1e4   : > { %3408 = vmatprep.subr.bf16.mxu1 %v3663_v8 }
 0x1ea   : > { %3282 = vmatmul.mubr.f32.vlgmr.msra.gmra.mrb[4].mxu1 %v3951_v12 }
 0x1eb   : > { %3410 = vmatpush3.bf16.msra.mxu1 %v3984_v49  ;;  %3288 = vmatprep.mubr.msk.f32.mxu1 %vm3664_vm1, %v3665_v10 }
 0x1ec   : > { %3411 = vmatprep.subr.bf16.mxu1 %v3663_v8 }
 0x1f2   : > { %3289 = vmatmul.mubr.f32.vlgmr.msra.gmra.mrb[4].mxu1 %v3951_v12 }
 0x1f3   : > { %3413 = vmatpush3.bf16.msra.mxu1 %v3997_v1  ;;  %3295 = vmatprep.mubr.msk.f32.mxu1 %vm3664_vm1, %v3665_v10 }
 0x1f4   : > { %3414 = vmatprep.subr.bf16.mxu1 %v3663_v8 }
 0x1f6   : > { %3296 = vmatmul.mubr.f32.vlgmr.msra.gmra.mrb[6].mxu1 %v3963_v27 }
 0x1f7   : > { %3416 = vmatpush3.bf16.msra.mxu1 %v4015_v22  ;;  %3302 = vmatprep.mubr.msk.f32.mxu1 %vm3664_vm1, %v3665_v10 }
 0x1f8   : > { %3417 = vmatprep.subr.bf16.mxu1 %v3663_v8 }
 0x1fe   : > { %3303 = vmatmul.mubr.f32.vlgmr.msra.gmra.mrb[6].mxu1 %v3951_v12 }
 0x1ff   : > { %3419 = vmatpush3.bf16.msra.mxu1 %v3418_v11  ;;  %3309 = vmatprep.mubr.msk.f32.mxu1 %vm3664_vm1, %v3665_v10 }
 0x200   : > { %3420 = vmatprep.subr.bf16.mxu1 %v3663_v8 }
 0x206   : > { %3310 = vmatmul.mubr.f32.vlgmr.msra.gmra.mrb[6].mxu1 %v3954_v13 }
 0x207   : > { %3422 = vmatpush3.bf16.msra.mxu1 %v3997_v1  ;;  %3316 = vmatprep.mubr.msk.f32.mxu1 %vm3664_vm1, %v3665_v10 }
 0x208   : > { %3423 = vmatprep.subr.bf16.mxu1 %v3663_v8 }
 0x20e   : > { %3317 = vmatmul.mubr.f32.vlgmr.msra.gmra.mrb[6].mxu1 %v3957_v14 }
 0x20f   : > { %3425 = vmatpush3.bf16.msra.mxu1 %v4013_v17  ;;  %3323 = vmatprep.mubr.msk.f32.mxu1 %vm3664_vm1, %v3665_v10 }
 0x210   : > { %3426 = vmatprep.subr.bf16.mxu1 %v3663_v8 }
 0x216   : > { %3324 = vmatmul.mubr.f32.vlgmr.msra.gmra.mrb[6].mxu1 %v3951_v12 }
 0x217   : > { %3428 = vmatpush3.bf16.msra.mxu1 %v3997_v1  ;;  %3330 = vmatprep.mubr.msk.f32.mxu1 %vm3664_vm1, %v3665_v10 }
 0x21e   : > { %3331 = vmatmul.mubr.f32.vlgmr.msra.gmra.mrb[6].mxu1 %v3951_v12 }
 0x26d   : > { %v1446_v13 = vpop.f32.mrb[0].mxu1 }
 0x26e   : > { %2828 = vst.msk [vmem:[%s189_s20] sm:$0xff] %vm2827_vm2, %v1446_v13  ;;  %v3206_v14 = vpop.f32.mrb[1].mxu1 }
 0x299   : > { %v1905_v21 = vpop.f32.mrb[2].mxu1 }
 0x29a   : > { %2829 = vst.msk [vmem:[%s189_s20 + $0x8] sm:$0xff] %vm2827_vm2, %v1905_v21  ;;  %v3248_v8 = vpop.f32.mrb[3].mxu1 }
 0x2c5   : > { %v2364_v23 = vpop.f32.mrb[4].mxu1 }
 0x2c6   : > { %2830 = vst.msk [vmem:[%s189_s20 + $0x10] sm:$0xff] %vm2827_vm2, %v2364_v23  ;;  %v3290_v24 = vpop.f32.mrb[5].mxu1 }
 0x2f1   : > { %v2823_v10 = vpop.f32.mrb[6].mxu1 }
 0x2f2   : > { %2831 = vst.msk [vmem:[%s189_s20 + $0x18] sm:$0xff] %vm2827_vm2, %v2823_v10  ;;  %v3332_v12 = vpop.f32.mrb[7].mxu1 }
 0x2f3   : > { %3605 = shalt.err (!%p3602_p2)
}
 0x2f4   : > { %s3606_s4 = scalar_lea.hbm %s4134_s29, 512  ;;  %s3610_s8 = scalar_lea.hbm %s4182_s3, 1024 }
 0x2f5   : > { %p3607_p4 = scmp.ne.s32.totalorder %s4134_s29, %s3606_s4  ;;  %p3611_p9 = scmp.lt.u32.totalorder %s4134_s29, %s4182_s3 }
 0x2f6   : > { %p3612_p1 = scmp.lt.u32.totalorder %s3610_s8, %s3606_s4  ;;  %p3614_p6 = scmp.lt.u32.totalorder %s3606_s4, %s4134_s29 }
 0x2f7   : > { %p3608_p5 = pnand %p3607_p4, %p4189_p11 }
 0x2f8   : > { %p3613_p3 = por %p3612_p1, %p3611_p9 }
 0x2f9   : > { %p3609_p7 = pneg %p3608_p5 }
 0x2fa   : > { %p3615_p12 = por %p3614_p6, %p3613_p3 }
 0x2fc   : > { %p3616_p13 = pnand %p3615_p12, %p3609_p7 }
 0x2fe   : > { %3619 = shalt.err (!%p3616_p13)
}
 0x2ff   : > { %s3667_s19 = smov 128   ;;  %s3668_s20 = smov 8  }
 0x300   : > { %3511 = dma.vmem_to_hbm [thread:$0]  (%p4189_p11), %s4129_s22, 512, %s4134_s29, %s2833_s30, %s3667_s19, %s3667_s19, %s3668_s20  }
 0x301 PF: > { %s2861_s26 = sand.u32 1, %s3646_s12   ;;  %p4190_p8 = scmp.ne.s32.totalorder %s4187_s25, 0 }
 0x302   : > { %p4191_p10 = scmp.ge.s32.totalorder %s3658_s15, 2  ;;  %s2862_s27 = scalar_lea.sflag [#allocation4], %s2861_s26 }
 0x304   : > { %p3518_p0 = pnand %p4191_p10, %p4190_p8 }
 0x306   : > { %3641 = dma.done.wait (!%p3518_p0), %s2862_s27, 512  }
 0x307   : > { %3643 = vsyncadd (!%p3518_p0), %s2862_s27, 4294966784  ;;  %p16_p2 = scmp.ge.s32.totalorder %s3714_s18, 4   ;;  %s4192_s12 = smov %s3650_s13 }
 0x308   : > { %s4193_s13 = smov %s3654_s14  ;;  %s4194_s14 = smov %s3726_s21 }
 0x309   : > { %s4195_s15 = smov %s3714_s18  ;;  %18 = sbr.rel (!%p16_p2) target bundleno = 5 (0x5), region = 77 }
 0x310   :  { %2867 = vsyncpa [#allocation3], 1 }
 0x311   :  { %2869 = vsyncpa [#allocation3 + $0x1], 1 }
 0x312   :  { %2870 = vsyncpa [#allocation4], 1 }
 0x313   :  { %2872 = vsyncpa [#allocation4 + $0x1], 1 }

</bundles_post_ra>
